<compile_context>
chip_gen: v7x
topology: tpu7x:2x2x1
jax: 0.10.0
libtpu: 0.0.40
codegen_flags: <defaults>
</compile_context>

<pallas_src>
import jax
import jax.numpy as jnp
from jax.experimental import pallas as pl
from jax.experimental.pallas import tpu as pltpu


def generator_kernel(x_ref, w1_ref, b1_ref, w2_ref, b2_ref, o_ref):
    # First linear: [Tb, Z] @ [Z, H] (bf16 operands, f32 accumulation) + [1, H].
    # Z=64 is deliberately left unpadded: the kernel is HBM-bound, so padding
    # the contraction dim would only double the x DMA for no gain.
    h = jnp.dot(x_ref[...].astype(jnp.bfloat16), w1_ref[...],
                preferred_element_type=jnp.float32)
    h = (h + b1_ref[...]).astype(jnp.bfloat16)   # bias add in f32, then bf16
    # LeakyReLU(negative_slope=0.01) on bf16 (VPU): max(h, 0.01*h).
    h = jnp.maximum(h, 0.01 * h)
    # Second linear: [Tb, H] @ [H, Ipad] (bf16 operands, f32 accumulation) + [1, Ipad]
    y = jnp.dot(h, w2_ref[...], preferred_element_type=jnp.float32)
    y = y + b2_ref[...]
    # Tanh on bf16 (halves EUP pushes on v6e/v7x) and lane-dense bf16 store.
    o_ref[...] = jnp.tanh(y.astype(jnp.bfloat16)).astype(o_ref.dtype)


def generator_forward(x, w1, b1, w2, b2):
    """x: [B, z_dim]; w1: [z_dim, 256]; b1: [1, 256]; w2: [256, img_size]; b2: [1, img_size].

    Returns [B, img_size] bfloat16 (upcast at the consumer if f32 is required).
    """
    B, Z = x.shape
    H = w1.shape[1]
    I = w2.shape[1]

    # Lane-pad the output feature dim to a multiple of 128 (784 -> 896).
    I_pad = pl.cdiv(I, 128) * 128
    if I_pad != I:
        w2 = jnp.pad(w2, ((0, 0), (0, I_pad - I)))
        b2 = jnp.pad(b2, ((0, 0), (0, I_pad - I)))

    # Batch tiling: large tiles for training-sized batches to amortize the
    # ~0.35 us/step pipeline overhead; whole (sublane-rounded) batch otherwise.
    if B >= 2048:
        tile_b = 1024
    elif B >= 512:
        tile_b = 512
    elif B >= 256:
        tile_b = 256
    else:
        tile_b = max(8, ((B + 7) // 8) * 8)
    B_pad = pl.cdiv(B, tile_b) * tile_b
    nb = B_pad // tile_b
    # Megacore (v7x) balance: prefer an even number of grid steps by halving
    # the tile (no extra padded rows, so 1-TC chips pay nothing).
    if nb % 2 == 1 and tile_b >= 512:
        tile_b //= 2
        nb *= 2
    if B_pad != B:
        x = jnp.pad(x, ((0, B_pad - B), (0, 0)))

    # bf16 weights for the MXU; biases stay f32 and add onto the f32 accumulator.
    w1 = w1.astype(jnp.bfloat16)
    w2 = w2.astype(jnp.bfloat16)

    out = pl.pallas_call(
        generator_kernel,
        out_shape=jax.ShapeDtypeStruct((B_pad, I_pad), jnp.bfloat16),
        grid=(nb,),
        in_specs=[
            pl.BlockSpec((tile_b, Z), lambda i: (i, 0)),   # x: tiled over batch
            pl.BlockSpec((Z, H), lambda i: (0, 0)),        # w1: resident
            pl.BlockSpec((1, H), lambda i: (0, 0)),        # b1: resident
            pl.BlockSpec((H, I_pad), lambda i: (0, 0)),    # w2: resident
            pl.BlockSpec((1, I_pad), lambda i: (0, 0)),    # b2: resident
        ],
        out_specs=pl.BlockSpec((tile_b, I_pad), lambda i: (i, 0)),
        compiler_params=pltpu.CompilerParams(
            dimension_semantics=("parallel",)),
    )(x, w1, b1, w2, b2)

    return out[:B, :I]


def init_params(key, z_dim, img_size, hidden=256):
    """Deterministic init matching PyTorch nn.Linear default: U(-1/sqrt(fan_in), 1/sqrt(fan_in))."""
    k1, k2, k3, k4 = jax.random.split(key, 4)
    lim1 = 1.0 / jnp.sqrt(z_dim)
    lim2 = 1.0 / jnp.sqrt(hidden)
    # Stored as [in, out] (transposed vs. PyTorch's [out, in]) for direct x @ W.
    w1 = jax.random.uniform(k1, (z_dim, hidden), jnp.float32, -lim1, lim1)
    b1 = jax.random.uniform(k2, (1, hidden), jnp.float32, -lim1, lim1)
    w2 = jax.random.uniform(k3, (hidden, img_size), jnp.float32, -lim2, lim2)
    b2 = jax.random.uniform(k4, (1, img_size), jnp.float32, -lim2, lim2)
    return w1, b1, w2, b2


if __name__ == "__main__":
    key = jax.random.PRNGKey(0)
    k_x, k_p = jax.random.split(key)

    batch = 8
    z_dim = 64
    img_size = 784  # MNIST 28*28 (flattened, as the MLP generator implies)

    # Noise sampled directly in bf16 by the producer (no wrapper-side astype),
    # halving the x HBM read; the in-kernel astype(bf16) is then a no-op.
    x = jax.random.normal(k_x, (batch, z_dim), jnp.bfloat16)
    w1, b1, w2, b2 = init_params(k_p, z_dim, img_size)

    out = generator_forward(x, w1, b1, w2, b2)
    out = jax.block_until_ready(out)

    # Reference check in plain JAX (f32 math on the same bf16 noise). Tolerance
    # loosened for bf16 MXU operands (f32 accumulation) and the bf16 output.
    x32 = x.astype(jnp.float32)
    h_ref = x32 @ w1 + b1
    h_ref = jnp.where(h_ref > 0, h_ref, 0.01 * h_ref)
    ref = jnp.tanh(h_ref @ w2 + b2)
    assert out.shape == (batch, img_size)
    assert out.dtype == jnp.bfloat16
    assert jnp.allclose(out.astype(jnp.float32), ref, atol=2e-2, rtol=2e-2)

    print("KERNEL_OK")
</pallas_src>

<mosaic_0001>
module attributes {stable_mosaic.version = 11 : i64} {
  func.func @generator_kernel(%arg0: i32, %arg1: memref<8x64xbf16, #tpu.memory_space<vmem>>, %arg2: memref<64x256xbf16, #tpu.memory_space<vmem>>, %arg3: memref<1x256xf32, #tpu.memory_space<vmem>>, %arg4: memref<256x896xbf16, #tpu.memory_space<vmem>>, %arg5: memref<1x896xf32, #tpu.memory_space<vmem>>, %arg6: memref<8x896xbf16, #tpu.memory_space<vmem>>) attributes {dimension_semantics = [#tpu.dimension_semantics<parallel>], iteration_bounds = array<i64: 1>, scalar_prefetch = 0 : i64, scratch_operands = 0 : i64, tpu.core_type = #tpu.core_type<tc>, window_params = [{transform_indices = @transform_0, window_bounds = array<i64: 8, 64>}, {pipeline_mode = #tpu.pipeline_mode<synchronous>, transform_indices = @transform_1, window_bounds = array<i64: 64, 256>}, {pipeline_mode = #tpu.pipeline_mode<synchronous>, transform_indices = @transform_2, window_bounds = array<i64: 1, 256>}, {pipeline_mode = #tpu.pipeline_mode<synchronous>, transform_indices = @transform_3, window_bounds = array<i64: 256, 896>}, {pipeline_mode = #tpu.pipeline_mode<synchronous>, transform_indices = @transform_4, window_bounds = array<i64: 1, 896>}, {transform_indices = @transform_5, window_bounds = array<i64: 8, 896>}]} {
    %c0 = arith.constant 0 : index
    %c0_0 = arith.constant 0 : index
    %0 = vector.load %arg1[%c0, %c0_0] : memref<8x64xbf16, #tpu.memory_space<vmem>>, vector<8x64xbf16>
    %c0_1 = arith.constant 0 : index
    %c0_2 = arith.constant 0 : index
    %1 = vector.load %arg2[%c0_1, %c0_2] : memref<64x256xbf16, #tpu.memory_space<vmem>>, vector<64x256xbf16>
    %cst = arith.constant dense<0.000000e+00> : vector<8x256xf32>
    %2 = tpu.matmul %0, %1, %cst {dimension_numbers = #tpu.dot_dimension_numbers<[1], [0], [0], [1], [0, 0, 1, 1], [], []>} : vector<8x64xbf16>, vector<64x256xbf16>, vector<8x256xf32> -> vector<8x256xf32>
    %c0_3 = arith.constant 0 : index
    %c0_4 = arith.constant 0 : index
    %3 = vector.load %arg3[%c0_3, %c0_4] : memref<1x256xf32, #tpu.memory_space<vmem>>, vector<1x256xf32>
    %4 = vector.broadcast %3 : vector<1x256xf32> to vector<8x256xf32>
    %5 = arith.addf %2, %4 : vector<8x256xf32>
    %6 = arith.truncf %5 : vector<8x256xf32> to vector<8x256xbf16>
    %cst_5 = arith.constant 1.000980e-02 : bf16
    %7 = vector.broadcast %cst_5 : bf16 to vector<8x256xbf16>
    %8 = arith.mulf %7, %6 : vector<8x256xbf16>
    %9 = arith.maximumf %6, %8 : vector<8x256xbf16>
    %c0_6 = arith.constant 0 : index
    %c0_7 = arith.constant 0 : index
    %10 = vector.load %arg4[%c0_6, %c0_7] : memref<256x896xbf16, #tpu.memory_space<vmem>>, vector<256x896xbf16>
    %cst_8 = arith.constant dense<0.000000e+00> : vector<8x896xf32>
    %11 = tpu.matmul %9, %10, %cst_8 {dimension_numbers = #tpu.dot_dimension_numbers<[1], [0], [0], [1], [0, 0, 1, 1], [], []>} : vector<8x256xbf16>, vector<256x896xbf16>, vector<8x896xf32> -> vector<8x896xf32>
    %c0_9 = arith.constant 0 : index
    %c0_10 = arith.constant 0 : index
    %12 = vector.load %arg5[%c0_9, %c0_10] : memref<1x896xf32, #tpu.memory_space<vmem>>, vector<1x896xf32>
    %13 = vector.broadcast %12 : vector<1x896xf32> to vector<8x896xf32>
    %14 = arith.addf %11, %13 : vector<8x896xf32>
    %15 = arith.truncf %14 : vector<8x896xf32> to vector<8x896xbf16>
    %16 = math.tanh %15 : vector<8x896xbf16>
    %c0_11 = arith.constant 0 : index
    %c0_12 = arith.constant 0 : index
    %17 = vector.load %arg6[%c0_11, %c0_12] : memref<8x896xbf16, #tpu.memory_space<vmem>>, vector<8x896xbf16>
    tpu.vector_store %arg6[%c0_11, %c0_12], %16 {strides = array<i32>} : memref<8x896xbf16, #tpu.memory_space<vmem>>, vector<8x896xbf16>,
    return
  }
  func.func @transform_0(%arg0: i32) -> (i32, i32) {
    %c0_i32 = arith.constant 0 : i32
    %c0_i32_0 = arith.constant 0 : i32
    return %arg0, %c0_i32 : i32, i32
  }
  func.func @transform_1(%arg0: i32) -> (i32, i32) {
    %c0_i32 = arith.constant 0 : i32
    %c0_i32_0 = arith.constant 0 : i32
    %c0_i32_1 = arith.constant 0 : i32
    return %c0_i32, %c0_i32_0 : i32, i32
  }
  func.func @transform_2(%arg0: i32) -> (i32, i32) {
    %c0_i32 = arith.constant 0 : i32
    %c0_i32_0 = arith.constant 0 : i32
    %c0_i32_1 = arith.constant 0 : i32
    return %c0_i32, %c0_i32_0 : i32, i32
  }
  func.func @transform_3(%arg0: i32) -> (i32, i32) {
    %c0_i32 = arith.constant 0 : i32
    %c0_i32_0 = arith.constant 0 : i32
    %c0_i32_1 = arith.constant 0 : i32
    return %c0_i32, %c0_i32_0 : i32, i32
  }
  func.func @transform_4(%arg0: i32) -> (i32, i32) {
    %c0_i32 = arith.constant 0 : i32
    %c0_i32_0 = arith.constant 0 : i32
    %c0_i32_1 = arith.constant 0 : i32
    return %c0_i32, %c0_i32_0 : i32, i32
  }
  func.func @transform_5(%arg0: i32) -> (i32, i32) {
    %c0_i32 = arith.constant 0 : i32
    %c0_i32_0 = arith.constant 0 : i32
    return %arg0, %c0_i32 : i32, i32
  }
}

</mosaic_0001>

<bundles_post_ra>
// kernel: tpu_custom_call.1
= control target key start
LH: loop header
LB: loop body
LE: loop exit
PB: predicated region body
PF: predicated region fallthrough
CT: control target
= control target key end

     0   :  { %10 = vsyncpa [#allocation3], 0  ;;  %s1686_s0 = inlined_call_operand.hbm [shape: bf16[8,64], index: 0, kind: input, shape index: {}]   ;;  %s1687_s1 = inlined_call_operand.hbm [shape: bf16[64,256], index: 1, kind: input, shape index: {}]   ;;  %s1688_s2 = inlined_call_operand.vmem [shape: f32[1,256], index: 2, kind: input, shape index: {}]   ;;  %s1689_s3 = inlined_call_operand.hbm [shape: bf16[256,896], index: 3, kind: input, shape index: {}]   ;;  %s1690_s4 = inlined_call_operand.vmem [shape: f32[1,896], index: 4, kind: input, shape index: {}]   ;;  %s1691_s5 = inlined_call_operand.hbm [shape: bf16[8,896], index: 5, kind: output, shape index: {}]  }
   0x1   :  { %11 = vsyncpa [#allocation6], 0 }
   0x2   :  { %12 = vsyncpa [#allocation4], 0  ;;  %s1570_s18 = smov [#allocation5]   ;;  %s1476_s22 = scalar_lea.hbm %s1687_s1, 1024 }
   0x3   :  { %s28_s19 = sshll.u32 %s1570_s18, 4  ;;  %p1477_p0 = scmp.ne.s32.totalorder %s1687_s1, %s1476_s22  ;;  %s29_s19 = int_to_ptr.vmem [resolvable:$true] %s28_s19 }
   0x4   :  { %p1480_p1 = scmp.lt.u32.totalorder %s1476_s22, %s1687_s1 }
   0x6   :  { %p1482_p2 = pnand %p1480_p1, %p1477_p0 }
   0x8   :  { %1485 = shalt.err (!%p1482_p2)
}
   0x9   :  { %s1486_s27 = scalar_lea.vmem %s29_s19, 1024  ;;  %p1491_p4 = scmp.lt.s32.totalorder %s29_s19, %s29_s19 }
   0xa   :  { %p1487_p3 = scmp.ne.s32.totalorder %s29_s19, %s1486_s27  ;;  %p1492_p5 = scmp.lt.s32.totalorder %s1486_s27, %s1486_s27 }
   0xc   :  { %p1493_p6 = por %p1492_p5, %p1491_p4 }
   0xe   :  { %p1494_p7 = pnand %p1493_p6, %p1487_p3 }
  0x10   :  { %1497 = shalt.err (!%p1494_p7)
}
  0x11   :  { %s1571_s28 = smov 128   ;;  %s1572_s29 = smov 8  }
  0x12   :  { %34 = dma.hbm_to_vmem [thread:$0]  %s1687_s1, 1024, %s29_s19, [#allocation6], %s1571_s28, %s1571_s28, %s1572_s29  }
  0x13   :  { %s1573_s7 = smov [#allocation2]   ;;  %s1574_s9 = smov [#allocation7]  }
  0x14   :  { %s19_s8 = sshll.u32 %s1573_s7, 4  ;;  %s42_s10 = sshll.u32 %s1574_s9, 4  ;;  %s20_s8 = int_to_ptr.vmem [resolvable:$true] %s19_s8  ;;  %s43_s10 = int_to_ptr.vmem [resolvable:$true] %s42_s10 }
  0x15   :  { %s1498_s13 = scalar_lea.hbm %s1686_s0, 64 }
  0x16   :  { %p1499_p8 = scmp.ne.s32.totalorder %s1686_s0, %s1498_s13  ;;  %p1502_p9 = scmp.lt.u32.totalorder %s1498_s13, %s1686_s0 }
  0x18   :  { %p1504_p10 = pnand %p1502_p9, %p1499_p8 }
  0x1a   :  { %1507 = shalt.err (!%p1504_p10)
}
  0x1b   :  { %s1508_s1 = scalar_lea.vmem %s20_s8, 64  ;;  %p1513_p12 = scmp.lt.s32.totalorder %s20_s8, %s20_s8 }
  0x1c   :  { %p1509_p11 = scmp.ne.s32.totalorder %s20_s8, %s1508_s1  ;;  %p1514_p13 = scmp.lt.s32.totalorder %s1508_s1, %s1508_s1 }
  0x1e   :  { %p1515_p0 = por %p1514_p13, %p1513_p12 }
  0x20   :  { %p1516_p1 = pnand %p1515_p0, %p1509_p11 }
  0x22   :  { %1519 = shalt.err (!%p1516_p1)
}
  0x23   :  { %22 = dma.hbm_to_vmem [thread:$0]  %s1686_s0, 64, %s20_s8, [#allocation3]  }
  0x24   :  { %s1520_s22 = scalar_lea.hbm %s1689_s3, 14336 }
  0x25   :  { %p1521_p2 = scmp.ne.s32.totalorder %s1689_s3, %s1520_s22  ;;  %p1524_p3 = scmp.lt.u32.totalorder %s1520_s22, %s1689_s3 }
  0x27   :  { %p1526_p4 = pnand %p1524_p3, %p1521_p2 }
  0x29   :  { %1529 = shalt.err (!%p1526_p4)
}
  0x2a   :  { %s1530_s27 = scalar_lea.vmem %s43_s10, 14336  ;;  %p1535_p6 = scmp.lt.s32.totalorder %s43_s10, %s43_s10 }
  0x2b   :  { %p1531_p5 = scmp.ne.s32.totalorder %s43_s10, %s1530_s27  ;;  %p1536_p7 = scmp.lt.s32.totalorder %s1530_s27, %s1530_s27 }
  0x2d   :  { %p1537_p8 = por %p1536_p7, %p1535_p6 }
  0x2f   :  { %p1538_p9 = pnand %p1537_p8, %p1531_p5 }
  0x31   :  { %1541 = shalt.err (!%p1538_p9)
}
  0x32   :  { %s1575_s0 = smov 448   ;;  %s1576_s28 = smov 28  }
  0x33   :  { %48 = dma.hbm_to_vmem [thread:$0]  %s1689_s3, 14336, %s43_s10, [#allocation6], %s1575_s0, %s1575_s0, %s1576_s28  }
  0x34   :  { %1564 = dma.done.wait [#allocation3], 64  }
  0x35   :  { %1565 = vsyncadd [#allocation3], 4294967232 }
  0x36   :  { %1566 = dma.done.wait [#allocation6], 15360  }
  0x37   :  { %1567 = vsyncadd [#allocation6], 4294951936  ;;  %v1577_v0 = vmov 0   ;;  %v1290_v1 = vld [vmem:[#allocation5 + $0x4] ss:$8 sps:$4 sm:$0xff]   ;;  %vm123_vm0 = vcmask 523264  }
  0x38   :  { %159 = vmatprep.mubr.bf16.mxu0 %v1577_v0  ;;  %v1292_v2 = vld [vmem:[#allocation5] ss:$8 sps:$4 sm:$0xff]   ;;  %127 = vmatprep.subr.bf16.mxu0 %v1290_v1  ;;  %v1293_v3 = vld [vmem:[#allocation5 + $0x14] ss:$8 sps:$4 sm:$0xff]   ;;  %v1295_v4 = vld [vmem:[#allocation5 + $0x10] ss:$8 sps:$4 sm:$0xff]  }
  0x39   :  { %128 = vmatpush1.bf16.msra.mxu0 %v1292_v2  ;;  %v1296_v5 = vld [vmem:[#allocation5 + $0x24] ss:$8 sps:$4 sm:$0xff]   ;;  %v1298_v7 = vld [vmem:[#allocation5 + $0x20] ss:$8 sps:$4 sm:$0xff]   ;;  %v1299_v8 = vld [vmem:[#allocation5 + $0x34] ss:$8 sps:$4 sm:$0xff]  }
  0x3a   :  { %129 = vmatprep.subr.bf16.mxu0 %v1293_v3  ;;  %v1302_v6 = vld [vmem:[#allocation7 + $0x4] ss:$28 sps:$4 sm:$0xff]   ;;  %v1308_v10 = vld [vmem:[#allocation7 + $0x3c] ss:$28 sps:$4 sm:$0xff]   ;;  %v1314_v13 = vld [vmem:[#allocation7 + $0x74] ss:$28 sps:$4 sm:$0xff]  }
  0x3b   :  { %915 = vmatprep.subr.bf16.mxu1 %v1302_v6  ;;  %v1307_v9 = vld [vmem:[#allocation7] ss:$28 sps:$4 sm:$0xff]   ;;  %v1301_v11 = vld [vmem:[#allocation5 + $0x30] ss:$8 sps:$4 sm:$0xff]   ;;  %v1306_v14 = vld [vmem:[#allocation7 + $0xc] ss:$28 sps:$4 sm:$0xff]  }
  0x3c   :  { %916 = vmatpush1.bf16.msra.mxu1 %v1307_v9  ;;  %v1313_v12 = vld [vmem:[#allocation7 + $0x38] ss:$28 sps:$4 sm:$0xff]   ;;  %v62_v15 = vld [vmem:[#allocation2] sm:$0xf]  ;;  %v1319_v16 = vld [vmem:[#allocation7 + $0x70] ss:$28 sps:$4 sm:$0xff]  }
  0x3d   :  { %130 = vmatpush1.bf16.msra.mxu0 %v1295_v4  ;;  %917 = vmatprep.subr.bf16.mxu1 %v1308_v10  ;;  %v1304_v17 = vld [vmem:[#allocation7 + $0x8] ss:$28 sps:$4 sm:$0xff]   ;;  %v1310_v20 = vld [vmem:[#allocation7 + $0x40] ss:$28 sps:$4 sm:$0xff]   ;;  %v1316_v25 = vld [vmem:[#allocation7 + $0x78] ss:$28 sps:$4 sm:$0xff]  }
  0x3e   :  { %131 = vmatprep.subr.bf16.mxu0 %v1296_v5  ;;  %v1320_v18 = vld [vmem:[#allocation7 + $0xac] ss:$28 sps:$4 sm:$0xff]   ;;  %v1312_v19 = vld [vmem:[#allocation7 + $0x44] ss:$28 sps:$4 sm:$0xff]   ;;  %v1318_v23 = vld [vmem:[#allocation7 + $0x7c] ss:$28 sps:$4 sm:$0xff]  }
  0x3f   :  { %v1325_v21 = vld [vmem:[#allocation7 + $0xa8] ss:$28 sps:$4 sm:$0xff]   ;;  %v1331_v24 = vld [vmem:[#allocation7 + $0xe0] ss:$28 sps:$4 sm:$0xff]   ;;  %v1324_v27 = vld [vmem:[#allocation7 + $0xb4] ss:$28 sps:$4 sm:$0xff]  }
  0x40   :  { %918 = vmatpush1.bf16.msra.mxu1 %v1313_v12  ;;  %v1326_v22 = vld [vmem:[#allocation7 + $0xe4] ss:$28 sps:$4 sm:$0xff]   ;;  %v1332_v26 = vld [vmem:[#allocation7 + $0x11c] ss:$28 sps:$4 sm:$0xff]   ;;  %v1322_v28 = vld [vmem:[#allocation7 + $0xb0] ss:$28 sps:$4 sm:$0xff]   ;;  %v73_v12 = vlaneseq }
  0x41   :  { %132 = vmatpush1.bf16.msra.mxu0 %v1298_v7  ;;  %919 = vmatprep.subr.bf16.mxu1 %v1314_v13  ;;  %v1337_v29 = vld [vmem:[#allocation7 + $0x118] ss:$28 sps:$4 sm:$0xff]   ;;  %v1330_v31 = vld [vmem:[#allocation7 + $0xec] ss:$28 sps:$4 sm:$0xff]   ;;  %v1336_v35 = vld [vmem:[#allocation7 + $0x124] ss:$28 sps:$4 sm:$0xff]  }
  0x42   :  { %133 = vmatprep.subr.bf16.mxu0 %v1299_v8  ;;  %v1338_v30 = vld [vmem:[#allocation7 + $0x154] ss:$28 sps:$4 sm:$0xff]   ;;  %v1328_v33 = vld [vmem:[#allocation7 + $0xe8] ss:$28 sps:$4 sm:$0xff]   ;;  %v1334_v36 = vld [vmem:[#allocation7 + $0x120] ss:$28 sps:$4 sm:$0xff]  }
  0x43   :  { %v1343_v32 = vld [vmem:[#allocation7 + $0x150] ss:$28 sps:$4 sm:$0xff]   ;;  %v1349_v37 = vld [vmem:[#allocation7 + $0x188] ss:$28 sps:$4 sm:$0xff]   ;;  %v1342_v39 = vld [vmem:[#allocation7 + $0x15c] ss:$28 sps:$4 sm:$0xff]  }
  0x44   :  { %920 = vmatpush1.bf16.msra.mxu1 %v1319_v16  ;;  %v1344_v34 = vld [vmem:[#allocation7 + $0x18c] ss:$28 sps:$4 sm:$0xff]   ;;  %v1350_v38 = vld [vmem:[#allocation7 + $0x1c4] ss:$28 sps:$4 sm:$0xff]   ;;  %v1340_v41 = vld [vmem:[#allocation7 + $0x158] ss:$28 sps:$4 sm:$0xff]  }
  0x45   :  { %134 = vmatpush1.bf16.msra.mxu0 %v1301_v11  ;;  %921 = vmatprep.subr.bf16.mxu1 %v1320_v18  ;;  %v1355_v40 = vld [vmem:[#allocation7 + $0x1c0] ss:$28 sps:$4 sm:$0xff]   ;;  %v1348_v43 = vld [vmem:[#allocation7 + $0x194] ss:$28 sps:$4 sm:$0xff]   ;;  %v1354_v45 = vld [vmem:[#allocation7 + $0x1cc] ss:$28 sps:$4 sm:$0xff]  }
  0x46   :  { %956 = vmatprep.subr.bf16.mxu0 %v1306_v14  ;;  %v1356_v42 = vld [vmem:[#allocation7 + $0x1fc] ss:$28 sps:$4 sm:$0xff]   ;;  %v1346_v44 = vld [vmem:[#allocation7 + $0x190] ss:$28 sps:$4 sm:$0xff]   ;;  %v1352_v49 = vld [vmem:[#allocation7 + $0x1c8] ss:$28 sps:$4 sm:$0xff]  }
  0x47   :  { %v1361_v46 = vld [vmem:[#allocation7 + $0x1f8] ss:$28 sps:$4 sm:$0xff]   ;;  %v1367_v48 = vld [vmem:[#allocation7 + $0x230] ss:$28 sps:$4 sm:$0xff]   ;;  %v1360_v51 = vld [vmem:[#allocation7 + $0x204] ss:$28 sps:$4 sm:$0xff]  }
  0x48   :  { %1142 = vmatmul.mubr.msk.bf16.vlgmr.msra.gmra.mrb[0].mxu0 %vm123_vm0, %v62_v15  ;;  %922 = vmatpush1.bf16.msra.mxu1 %v1325_v21  ;;  %v1362_v47 = vld [vmem:[#allocation7 + $0x234] ss:$28 sps:$4 sm:$0xff]   ;;  %v1368_v50 = vld [vmem:[#allocation7 + $0x26c] ss:$28 sps:$4 sm:$0xff]   ;;  %v1358_v53 = vld [vmem:[#allocation7 + $0x200] ss:$28 sps:$4 sm:$0xff]  }
  0x49   :  { %957 = vmatpush1.bf16.msra.mxu0 %v1304_v17  ;;  %923 = vmatprep.subr.bf16.mxu1 %v1326_v22  ;;  %v1373_v52 = vld [vmem:[#allocation7 + $0x268] ss:$28 sps:$4 sm:$0xff]   ;;  %v1366_v55 = vld [vmem:[#allocation7 + $0x23c] ss:$28 sps:$4 sm:$0xff]   ;;  %v1372_v59 = vld [vmem:[#allocation7 + $0x274] ss:$28 sps:$4 sm:$0xff]  }
  0x4a   :  { %958 = vmatprep.subr.bf16.mxu0 %v1312_v19  ;;  %v1374_v54 = vld [vmem:[#allocation7 + $0x2a4] ss:$28 sps:$4 sm:$0xff]   ;;  %v1364_v57 = vld [vmem:[#allocation7 + $0x238] ss:$28 sps:$4 sm:$0xff]   ;;  %v1370_v61 = vld [vmem:[#allocation7 + $0x270] ss:$28 sps:$4 sm:$0xff]  }
  0x4b   :  { %v1379_v56 = vld [vmem:[#allocation7 + $0x2a0] ss:$28 sps:$4 sm:$0xff]   ;;  %v1385_v60 = vld [vmem:[#allocation7 + $0x2d8] ss:$28 sps:$4 sm:$0xff]   ;;  %v1378_v62 = vld [vmem:[#allocation7 + $0x2ac] ss:$28 sps:$4 sm:$0xff]  }
  0x4c   :  { %924 = vmatpush1.bf16.msra.mxu1 %v1331_v24  ;;  %v1380_v58 = vld [vmem:[#allocation7 + $0x2dc] ss:$28 sps:$4 sm:$0xff]   ;;  %v1376_v63 = vld [vmem:[#allocation7 + $0x2a8] ss:$28 sps:$4 sm:$0xff]   ;;  %v1386_v2 = vld [vmem:[#allocation7 + $0x314] ss:$28 sps:$4 sm:$0xff]  }
  0x4d   :  { %959 = vmatpush1.bf16.msra.mxu0 %v1310_v20  ;;  %925 = vmatprep.subr.bf16.mxu1 %v1332_v26  ;;  %v1384_v0 = vld [vmem:[#allocation7 + $0x2e4] ss:$28 sps:$4 sm:$0xff]   ;;  %v1390_v3 = vld [vmem:[#allocation7 + $0x31c] ss:$28 sps:$4 sm:$0xff]   ;;  %v1391_v5 = vld [vmem:[#allocation7 + $0x310] ss:$28 sps:$4 sm:$0xff]  }
  0x4e   :  { %960 = vmatprep.subr.bf16.mxu0 %v1318_v23  ;;  %v1382_v1 = vld [vmem:[#allocation7 + $0x2e0] ss:$28 sps:$4 sm:$0xff]   ;;  %v1388_v4 = vld [vmem:[#allocation7 + $0x318] ss:$28 sps:$4 sm:$0xff]   ;;  %v1392_v6 = vld [vmem:[#allocation7 + $0x34c] ss:$28 sps:$4 sm:$0xff]  }
  0x4f   :  { %v1396_v7 = vld [vmem:[#allocation7 + $0x354] ss:$28 sps:$4 sm:$0xff]   ;;  %v1397_v9 = vld [vmem:[#allocation7 + $0x348] ss:$28 sps:$4 sm:$0xff]   ;;  %v1645_v13 = vshrl.u32 %v73_v12, 7 }
  0x50   :  { %926 = vmatpush1.bf16.msra.mxu1 %v1337_v29  ;;  %v1394_v8 = vld [vmem:[#allocation7 + $0x350] ss:$28 sps:$4 sm:$0xff]   ;;  %v1401_v11 = vld [vmem:[#allocation7 + $0x1d8] ss:$28 sps:$4 sm:$0xff]  }
  0x51   :  { %961 = vmatpush1.bf16.msra.mxu0 %v1316_v25  ;;  %927 = vmatprep.subr.bf16.mxu1 %v1338_v30  ;;  %v1400_v10 = vld [vmem:[#allocation7 + $0x14] ss:$28 sps:$4 sm:$0xff]   ;;  %v75_v14 = vsub.s32 0, %v1645_v13  ;;  %v79_v16 = vsub.s32 1, %v1645_v13 }
  0x52   :  { %962 = vmatprep.subr.bf16.mxu0 %v1324_v27  ;;  %v71_v15 = vld [vmem:[%s1688_s2] sm:$0x3]  ;;  %v1398_v30 = vld [vmem:[#allocation7 + $0x10] ss:$28 sps:$4 sm:$0xff]  }
  0x53   :  { %v76_v17 = vrot.slane %v71_v15, %v75_v14  ;;  %v80_v18 = vrot.slane %v71_v15, %v79_v16  ;;  %v1459_v12 = vld [vmem:[#allocation7 + $0x358] ss:$28 sps:$4 sm:$0xff]   ;;  %v314_v15 = vsub.s32 2, %v1645_v13 }
  0x54   :  { %928 = vmatpush1.bf16.msra.mxu1 %v1343_v32 }
  0x55   :  { %963 = vmatpush1.bf16.msra.mxu0 %v1322_v28  ;;  %929 = vmatprep.subr.bf16.mxu1 %v1344_v34  ;;  %v1406_v34 = vld [vmem:[#allocation7 + $0x210] ss:$28 sps:$4 sm:$0xff]  }
  0x56   :  { %964 = vmatprep.subr.bf16.mxu0 %v1330_v31  ;;  %v1402_v31 = vld [vmem:[#allocation7 + $0x18] ss:$28 sps:$4 sm:$0xff]  }
  0x58   :  { %930 = vmatpush1.bf16.msra.mxu1 %v1349_v37  ;;  %v1410_v37 = vld [vmem:[#allocation7 + $0x84] ss:$28 sps:$4 sm:$0xff]  }
  0x59   :  { %965 = vmatpush1.bf16.msra.mxu0 %v1328_v33  ;;  %931 = vmatprep.subr.bf16.mxu1 %v1350_v38  ;;  %v1405_v33 = vld [vmem:[#allocation7 + $0x4c] ss:$28 sps:$4 sm:$0xff]  }
  0x5a   :  { %966 = vmatprep.subr.bf16.mxu0 %v1336_v35  ;;  %v1403_v35 = vld [vmem:[#allocation7 + $0x48] ss:$28 sps:$4 sm:$0xff]  }
  0x5b   :  { %v1411_v38 = vld [vmem:[#allocation7 + $0x248] ss:$28 sps:$4 sm:$0xff]  }
  0x5c   :  { %932 = vmatpush1.bf16.msra.mxu1 %v1355_v40  ;;  %v1412_v40 = vld [vmem:[#allocation7 + $0x88] ss:$28 sps:$4 sm:$0xff]  }
  0x5d   :  { %967 = vmatpush1.bf16.msra.mxu0 %v1334_v36  ;;  %933 = vmatprep.subr.bf16.mxu1 %v1356_v42  ;;  %v1407_v36 = vld [vmem:[#allocation7 + $0x50] ss:$28 sps:$4 sm:$0xff]   ;;  %v1416_v42 = vld [vmem:[#allocation7 + $0x280] ss:$28 sps:$4 sm:$0xff]  }
  0x5e   :  { %968 = vmatprep.subr.bf16.mxu0 %v1342_v39  ;;  %v1408_v39 = vld [vmem:[#allocation7 + $0x80] ss:$28 sps:$4 sm:$0xff]  }
  0x60   :  { %934 = vmatpush1.bf16.msra.mxu1 %v1361_v46  ;;  %v1421_v46 = vld [vmem:[#allocation7 + $0x2b8] ss:$28 sps:$4 sm:$0xff]  }
  0x61   :  { %969 = vmatpush1.bf16.msra.mxu0 %v1340_v41  ;;  %935 = vmatprep.subr.bf16.mxu1 %v1362_v47  ;;  %v1415_v41 = vld [vmem:[#allocation7 + $0xbc] ss:$28 sps:$4 sm:$0xff]   ;;  %v1418_v47 = vld [vmem:[#allocation7 + $0xf0] ss:$28 sps:$4 sm:$0xff]  }
  0x62   :  { %970 = vmatprep.subr.bf16.mxu0 %v1348_v43  ;;  %v1413_v43 = vld [vmem:[#allocation7 + $0xb8] ss:$28 sps:$4 sm:$0xff]  }
  0x64   :  { %936 = vmatpush1.bf16.msra.mxu1 %v1367_v48  ;;  %v1422_v48 = vld [vmem:[#allocation7 + $0xf8] ss:$28 sps:$4 sm:$0xff]  }
  0x65   :  { %971 = vmatpush1.bf16.msra.mxu0 %v1346_v44  ;;  %937 = vmatprep.subr.bf16.mxu1 %v1368_v50  ;;  %v1417_v44 = vld [vmem:[#allocation7 + $0xc0] ss:$28 sps:$4 sm:$0xff]   ;;  %v1426_v50 = vld [vmem:[#allocation7 + $0x2f0] ss:$28 sps:$4 sm:$0xff]  }
  0x66   :  { %972 = vmatprep.subr.bf16.mxu0 %v1354_v45  ;;  %v1420_v45 = vld [vmem:[#allocation7 + $0xf4] ss:$28 sps:$4 sm:$0xff]  }
  0x68   :  { %938 = vmatpush1.bf16.msra.mxu1 %v1373_v52  ;;  %v1427_v52 = vld [vmem:[#allocation7 + $0x130] ss:$28 sps:$4 sm:$0xff]  }
  0x69   :  { %973 = vmatpush1.bf16.msra.mxu0 %v1352_v49  ;;  %939 = vmatprep.subr.bf16.mxu1 %v1374_v54  ;;  %v1425_v49 = vld [vmem:[#allocation7 + $0x12c] ss:$28 sps:$4 sm:$0xff]  }
  0x6a   :  { %974 = vmatprep.subr.bf16.mxu0 %v1360_v51  ;;  %v1423_v51 = vld [vmem:[#allocation7 + $0x128] ss:$28 sps:$4 sm:$0xff]  }
  0x6b   :  { %v1431_v54 = vld [vmem:[#allocation7 + $0x328] ss:$28 sps:$4 sm:$0xff]  }
  0x6c   :  { %940 = vmatpush1.bf16.msra.mxu1 %v1379_v56  ;;  %v1432_v56 = vld [vmem:[#allocation7 + $0x168] ss:$28 sps:$4 sm:$0xff]  }
  0x6d   :  { %975 = vmatpush1.bf16.msra.mxu0 %v1358_v53  ;;  %941 = vmatprep.subr.bf16.mxu1 %v1380_v58  ;;  %v1430_v53 = vld [vmem:[#allocation7 + $0x164] ss:$28 sps:$4 sm:$0xff]  }
  0x6e   :  { %976 = vmatprep.subr.bf16.mxu0 %v1366_v55  ;;  %v1428_v55 = vld [vmem:[#allocation7 + $0x160] ss:$28 sps:$4 sm:$0xff]  }
  0x6f   :  { %v1436_v58 = vld [vmem:[#allocation7 + $0x360] ss:$28 sps:$4 sm:$0xff]  }
  0x70   :  { %942 = vmatpush1.bf16.msra.mxu1 %v1385_v60  ;;  %v1437_v60 = vld [vmem:[#allocation7 + $0x1a0] ss:$28 sps:$4 sm:$0xff]  }
  0x71   :  { %977 = vmatpush1.bf16.msra.mxu0 %v1364_v57  ;;  %943 = vmatprep.subr.bf16.mxu1 %v1386_v2  ;;  %v1435_v57 = vld [vmem:[#allocation7 + $0x19c] ss:$28 sps:$4 sm:$0xff]  }
  0x72   :  { %978 = vmatprep.subr.bf16.mxu0 %v1372_v59  ;;  %v1433_v59 = vld [vmem:[#allocation7 + $0x198] ss:$28 sps:$4 sm:$0xff]   ;;  %v1444_v2 = vld [vmem:[#allocation7 + $0x240] ss:$28 sps:$4 sm:$0xff]  }
  0x74   :  { %944 = vmatpush1.bf16.msra.mxu1 %v1391_v5  ;;  %v1452_v5 = vld [vmem:[#allocation7 + $0x2b4] ss:$28 sps:$4 sm:$0xff]  }
  0x75   :  { %979 = vmatpush1.bf16.msra.mxu0 %v1370_v61  ;;  %945 = vmatprep.subr.bf16.mxu1 %v1392_v6  ;;  %v1440_v61 = vld [vmem:[#allocation7 + $0x1d4] ss:$28 sps:$4 sm:$0xff]  }
  0x76   :  { %980 = vmatprep.subr.bf16.mxu0 %v1378_v62  ;;  %v1438_v62 = vld [vmem:[#allocation7 + $0x1d0] ss:$28 sps:$4 sm:$0xff]  }
  0x77   :  { %v1450_v6 = vld [vmem:[#allocation7 + $0x2b0] ss:$28 sps:$4 sm:$0xff]  }
  0x78   :  { %946 = vmatpush1.bf16.msra.mxu1 %v1397_v9  ;;  %v1458_v9 = vld [vmem:[#allocation7 + $0x324] ss:$28 sps:$4 sm:$0xff]  }
  0x79   :  { %981 = vmatpush1.bf16.msra.mxu0 %v1376_v63  ;;  %997 = vmatprep.subr.bf16.mxu1 %v1400_v10  ;;  %v1443_v63 = vld [vmem:[#allocation7 + $0x20c] ss:$28 sps:$4 sm:$0xff]   ;;  %v1456_v10 = vld [vmem:[#allocation7 + $0x320] ss:$28 sps:$4 sm:$0xff]  }
  0x7a   :  { %982 = vmatprep.subr.bf16.mxu0 %v1384_v0  ;;  %v1441_v0 = vld [vmem:[#allocation7 + $0x208] ss:$28 sps:$4 sm:$0xff]  }
  0x7d   :  { %983 = vmatpush1.bf16.msra.mxu0 %v1382_v1  ;;  %v1446_v1 = vld [vmem:[#allocation7 + $0x244] ss:$28 sps:$4 sm:$0xff]  }
  0x7e   :  { %984 = vmatprep.subr.bf16.mxu0 %v1390_v3  ;;  %v1449_v3 = vld [vmem:[#allocation7 + $0x27c] ss:$28 sps:$4 sm:$0xff]  }
  0x81   :  { %985 = vmatpush1.bf16.msra.mxu0 %v1388_v4  ;;  %v1447_v4 = vld [vmem:[#allocation7 + $0x278] ss:$28 sps:$4 sm:$0xff]  }
  0x82   :  { %986 = vmatprep.subr.bf16.mxu0 %v1396_v7  ;;  %v1455_v7 = vld [vmem:[#allocation7 + $0x2ec] ss:$28 sps:$4 sm:$0xff]  }
  0x85   :  { %987 = vmatpush1.bf16.msra.mxu0 %v1394_v8  ;;  %v1453_v8 = vld [vmem:[#allocation7 + $0x2e8] ss:$28 sps:$4 sm:$0xff]  }
  0x86   :  { %1259 = vmatprep.subr.bf16.mxu0 %v1401_v11  ;;  %v1461_v11 = vld [vmem:[#allocation7 + $0x35c] ss:$28 sps:$4 sm:$0xff]  }
 0x11b   :  { %v161_v19 = vpop.f32.mrb[0].mxu0 }
 0x11c   :  { %v162_v20 = vadd.f32 %v161_v19, %v76_v17  ;;  %v163_v21 = vpop.f32.mrb[1].mxu0  ;;  %v302_v17 = vld [vmem:[%s1690_s4] sm:$0xff]  ;;  %s1578_s4 = smov [#allocation8]  }
 0x11d   :  { %v164_v22 = vadd.f32 %v163_v21, %v80_v18  ;;  %v165_v23 = vpop.f32.mrb[2].mxu0  ;;  %v318_v18 = vsub.s32 3, %v1645_v13  ;;  %v307_v19 = vrot.slane %v302_v17, %v75_v14  ;;  %v311_v21 = vrot.slane %v302_v17, %v79_v16  ;;  %s1124_s8 = sshll.u32 %s1578_s4, 4  ;;  %s1125_s8 = int_to_ptr.vmem [resolvable:$true] %s1124_s8 }
 0x11e   :  { %v168_v24 = vpack.c.bf16 %v162_v20, %v162_v20  ;;  %v166_v25 = vpop.f32.mrb[3].mxu0  ;;  %v315_v20 = vrot.slane %v302_v17, %v314_v15  ;;  %s1542_s9 = scalar_lea.vmem %s1125_s8, 448  ;;  %p1547_p11 = scmp.lt.s32.totalorder %s1125_s8, %s1125_s8 }
 0x11f   :  { %v169_v26 = vpack.c.bf16 %v164_v22, %v164_v22  ;;  %v319_v22 = vrot.slane %v302_v17, %v318_v18  ;;  %p1543_p10 = scmp.ne.s32.totalorder %s1125_s8, %s1542_s9  ;;  %p1548_p12 = scmp.lt.s32.totalorder %s1542_s9, %s1542_s9 }
 0x120   :  { %v170_v27 = vmul.bf16 1009007652, %v168_v24 }
 0x121   :  { %v171_v28 = vmul.bf16 1009007652, %v169_v26  ;;  %p1549_p13 = por %p1548_p12, %p1547_p11 }
 0x122   :  { %v1656_v32 = vmax.bf16 %v170_v27, %v168_v24 }
 0x123   :  { %v173_v29 = vmax.bf16 %v171_v28, %v169_v26  ;;  %p1550_p0 = pnand %p1549_p13, %p1543_p10 }
 0x125   :  { %947 = vmatprep.mubr.bf16.mxu1 %v173_v29  ;;  %988 = vmatprep.mubr.bf16.mxu0 %v173_v29 }
 0x126   :  { %948 = vmatmul.mubr.bf16.vlgmr.msra.gmra.mrb[0].mxu1 %v1656_v32  ;;  %989 = vmatmul.mubr.bf16.vlgmr.msra.gmra.mrb[4].mxu0 %v1656_v32 }
 0x127   :  { %998 = vmatpush1.bf16.msra.mxu1 %v1398_v30  ;;  %1260 = vmatpush3.bf16.msra.mxu0 %v1402_v31 }
 0x128   :  { %1029 = vmatprep.mubr.bf16.mxu1 %v173_v29  ;;  %1070 = vmatprep.mubr.bf16.mxu0 %v173_v29 }
 0x129   :  { %999 = vmatprep.subr.bf16.mxu1 %v1405_v33  ;;  %1261 = vmatprep.subr.bf16.mxu0 %v1406_v34 }
 0x12b   :  { %1000 = vmatpush1.bf16.msra.mxu1 %v1403_v35  ;;  %1262 = vmatpush3.bf16.msra.mxu0 %v1407_v36 }
 0x12c   :  { %1001 = vmatprep.subr.bf16.mxu1 %v1410_v37  ;;  %1263 = vmatprep.subr.bf16.mxu0 %v1411_v38 }
 0x12f   :  { %1002 = vmatpush1.bf16.msra.mxu1 %v1408_v39  ;;  %1264 = vmatpush3.bf16.msra.mxu0 %v1412_v40 }
 0x130   :  { %1003 = vmatprep.subr.bf16.mxu1 %v1415_v41  ;;  %1265 = vmatprep.subr.bf16.mxu0 %v1416_v42 }
 0x133   :  { %1004 = vmatpush1.bf16.msra.mxu1 %v1413_v43  ;;  %1266 = vmatpush3.bf16.msra.mxu0 %v1417_v44  ;;  %v330_v43 = vsub.s32 6, %v1645_v13 }
 0x134   :  { %1005 = vmatprep.subr.bf16.mxu1 %v1420_v45  ;;  %1267 = vmatprep.subr.bf16.mxu0 %v1421_v46 }
 0x135   :  { %v331_v45 = vrot.slane %v302_v17, %v330_v43 }
 0x137   :  { %1006 = vmatpush1.bf16.msra.mxu1 %v1418_v47  ;;  %1268 = vmatpush3.bf16.msra.mxu0 %v1422_v48 }
 0x138   :  { %1007 = vmatprep.subr.bf16.mxu1 %v1425_v49  ;;  %1269 = vmatprep.subr.bf16.mxu0 %v1426_v50 }
 0x13b   :  { %1008 = vmatpush1.bf16.msra.mxu1 %v1423_v51  ;;  %1270 = vmatpush3.bf16.msra.mxu0 %v1427_v52 }
 0x13c   :  { %1009 = vmatprep.subr.bf16.mxu1 %v1430_v53  ;;  %1271 = vmatprep.subr.bf16.mxu0 %v1431_v54  ;;  %v322_v54 = vsub.s32 4, %v1645_v13 }
 0x13f   :  { %1010 = vmatpush1.bf16.msra.mxu1 %v1428_v55  ;;  %1272 = vmatpush3.bf16.msra.mxu0 %v1432_v56  ;;  %v326_v55 = vsub.s32 5, %v1645_v13  ;;  %v323_v56 = vrot.slane %v302_v17, %v322_v54 }
 0x140   :  { %1011 = vmatprep.subr.bf16.mxu1 %v1435_v57  ;;  %1273 = vmatprep.subr.bf16.mxu0 %v1436_v58 }
 0x141   :  { %v327_v57 = vrot.slane %v302_v17, %v326_v55 }
 0x143   :  { %1012 = vmatpush1.bf16.msra.mxu1 %v1433_v59  ;;  %1274 = vmatpush3.bf16.msra.mxu0 %v1437_v60 }
 0x144   :  { %1013 = vmatprep.subr.bf16.mxu1 %v1440_v61 }
 0x146   :  { %1071 = vmatmul.mubr.bf16.vlgmr.msra.gmra.mrb[8].mxu0 %v1656_v32 }
 0x147   :  { %1014 = vmatpush1.bf16.msra.mxu1 %v1438_v62 }
 0x148   :  { %1015 = vmatprep.subr.bf16.mxu1 %v1443_v63 }
 0x14b   :  { %1016 = vmatpush1.bf16.msra.mxu1 %v1441_v0 }
 0x14c   :  { %1017 = vmatprep.subr.bf16.mxu1 %v1446_v1 }
 0x14f   :  { %1018 = vmatpush1.bf16.msra.mxu1 %v1444_v2 }
 0x150   :  { %1019 = vmatprep.subr.bf16.mxu1 %v1449_v3 }
 0x153   :  { %1020 = vmatpush1.bf16.msra.mxu1 %v1447_v4 }
 0x154   :  { %1021 = vmatprep.subr.bf16.mxu1 %v1452_v5 }
 0x157   :  { %1022 = vmatpush1.bf16.msra.mxu1 %v1450_v6 }
 0x158   :  { %1023 = vmatprep.subr.bf16.mxu1 %v1455_v7 }
 0x15b   :  { %1024 = vmatpush1.bf16.msra.mxu1 %v1453_v8 }
 0x15c   :  { %1025 = vmatprep.subr.bf16.mxu1 %v1458_v9 }
 0x15f   :  { %1026 = vmatpush1.bf16.msra.mxu1 %v1456_v10 }
 0x160   :  { %1027 = vmatprep.subr.bf16.mxu1 %v1461_v11 }
 0x163   :  { %1028 = vmatpush1.bf16.msra.mxu1 %v1459_v12 }
 0x166   :  { %1030 = vmatmul.mubr.bf16.vlgmr.msra.gmra.mrb[4].mxu1 %v1656_v32 }
 0x1f9   :  { %v949_v23 = vpop.f32.mrb[0].mxu1  ;;  %v990_v24 = vpop.f32.mrb[4].mxu0 }
 0x1fa   :  { %v950_v25 = vadd.f32 %v949_v23, %v307_v19  ;;  %v991_v26 = vadd.f32 %v990_v24, %v315_v20  ;;  %v951_v27 = vpop.f32.mrb[1].mxu1  ;;  %v992_v28 = vpop.f32.mrb[5].mxu0 }
 0x1fb   :  { %v952_v29 = vadd.f32 %v951_v27, %v311_v21  ;;  %v993_v30 = vadd.f32 %v992_v28, %v319_v22  ;;  %v953_v31 = vpop.f32.mrb[2].mxu1  ;;  %v994_v32 = vpop.f32.mrb[6].mxu0 }
 0x1fc   :  { %v1078_v33 = vpack.c.bf16 %v950_v25, %v950_v25  ;;  %v1080_v34 = vpack.c.bf16 %v991_v26, %v991_v26  ;;  %v954_v35 = vpop.f32.mrb[3].mxu1  ;;  %v995_v36 = vpop.f32.mrb[7].mxu0 }
 0x1fd   :  { %v1079_v14 = vpack.c.bf16 %v952_v29, %v952_v29  ;;  %v1081_v37 = vpack.c.bf16 %v993_v30, %v993_v30 }
 0x1fe   :  { %1462 = vtanh.bf16 %v1078_v33 }
 0x1ff   :  { %1464 = vtanh.bf16 %v1080_v34 }
 0x200   :  { %1466 = vtanh.bf16 %v1079_v14 }
 0x201   :  { %1468 = vtanh.bf16 %v1081_v37 }
 0x209   :  { %v1463_v16 = vpop.eup %1462 }
 0x20a   :  { %v1465_v38 = vpop.eup %1464 }
 0x20b   :  { %v1467_v39 = vpop.eup %1466 }
 0x20c   :  { %v1469_v40 = vpop.eup %1468  ;;  %v1255_v41 = vcombine.low %v1463_v16, %v1467_v39 }
 0x20d   :  { %v1256_v42 = vcombine.low %v1465_v38, %v1469_v40 }
 0x20e   :  { %1114 = vst [vmem:[#allocation8] sm:$0xff] %v1255_v41 }
 0x20f   :  { %1115 = vst [vmem:[#allocation8 + $0x8] sm:$0xff] %v1256_v42 }
 0x219   :  { %v1275_v44 = vpop.f32.mrb[8].mxu0 }
 0x21a   :  { %v1276_v46 = vpop.f32.mrb[9].mxu0 }
 0x21b   :  { %v1277_v47 = vadd.f32 %v1276_v46, %v1275_v44  ;;  %v1278_v48 = vpop.f32.mrb[10].mxu0 }
 0x21c   :  { %v1279_v49 = vpop.f32.mrb[11].mxu0 }
 0x21d   :  { %v1073_v50 = vadd.f32 %v1277_v47, %v331_v45 }
 0x21f   :  { %v1084_v51 = vpack.c.bf16 %v1073_v50, %v1073_v50 }
 0x221   :  { %1470 = vtanh.bf16 %v1084_v51 }
 0x22c   :  { %v1471_v52 = vpop.eup %1470 }
 0x22d   :  { %v1258_v53 = vcombine.low %v1471_v52, %v1471_v52 }
 0x22f   :  { %1117 = vst [vmem:[#allocation8 + $0x18] sm:$0xf] %v1258_v53 }
 0x239   :  { %v1031_v58 = vpop.f32.mrb[4].mxu1 }
 0x23a   :  { %v1032_v59 = vadd.f32 %v1031_v58, %v323_v56  ;;  %v1033_v60 = vpop.f32.mrb[5].mxu1 }
 0x23b   :  { %v1034_v61 = vadd.f32 %v1033_v60, %v327_v57  ;;  %v1035_v62 = vpop.f32.mrb[6].mxu1 }
 0x23c   :  { %v1082_v63 = vpack.c.bf16 %v1032_v59, %v1032_v59  ;;  %v1036_v0 = vpop.f32.mrb[7].mxu1 }
 0x23d   :  { %v1083_v1 = vpack.c.bf16 %v1034_v61, %v1034_v61 }
 0x23e   :  { %1472 = vtanh.bf16 %v1082_v63 }
 0x23f   :  { %1474 = vtanh.bf16 %v1083_v1 }
 0x249   :  { %v1473_v2 = vpop.eup %1472 }
 0x24a   :  { %v1475_v3 = vpop.eup %1474 }
 0x24b   :  { %v1257_v4 = vcombine.low %v1473_v2, %v1475_v3 }
 0x24d   :  { %1116 = vst [vmem:[#allocation8 + $0x10] sm:$0xff] %v1257_v4 }
 0x24e   :  { %1553 = shalt.err (!%p1550_p0)
}
 0x24f   :  { %s1554_s12 = scalar_lea.hbm %s1691_s5, 448 }
 0x250   :  { %p1555_p1 = scmp.ne.s32.totalorder %s1691_s5, %s1554_s12  ;;  %p1558_p2 = scmp.lt.u32.totalorder %s1554_s12, %s1691_s5 }
 0x252   :  { %p1560_p3 = pnand %p1558_p2, %p1555_p1 }
 0x254   :  { %1563 = shalt.err (!%p1560_p3)
}
 0x255   :  { %1127 = dma.vmem_to_hbm [thread:$0]  %s1125_s8, 448, %s1691_s5, [#allocation4]  }
 0x256   :  { %1568 = dma.done.wait [#allocation4], 448  }
 0x257   :  { %1569 = vsyncadd [#allocation4], 4294966848 }
 0x258   :  { %1131 = vsyncpa [#allocation3], 1 }
 0x259   :  { %1132 = vsyncpa [#allocation6], 1 }
 0x25a   :  { %1133 = vsyncpa [#allocation4], 1 }

</bundles_post_ra>
